<compile_context>
chip_gen: v5e
topology: v5e:2x2
jax: 0.10.0
libtpu: 0.0.40
codegen_flags: <defaults>
</compile_context>

<pallas_src>
import functools

import jax
import jax.numpy as jnp
from jax.experimental import pallas as pl
from jax.experimental.pallas import tpu as pltpu

EPS = 1e-5  # nn.GroupNorm default


def _cdiv(a, b):
    return -(-a // b)


def _round_up(a, m):
    return _cdiv(a, m) * m


def _vmem_budget():
    """Returns (requestable vmem cap, target block bytes, resident-sample cap)."""
    try:
        phys = int(pltpu.get_tpu_info().vmem_capacity_bytes)
    except Exception:
        phys = 64 << 20  # unknown chip -> assume v7x-like (most restrictive)
    if phys >= (100 << 20):
        # v5e / v6e: 128 MiB physical VMEM.
        return 96 << 20, 6 << 20, 16 << 20
    # v7x: 64 MiB per TensorCore -> leave headroom for Mosaic scratch.
    return 48 << 20, 3 << 20, 8 << 20


def _pick_r_blk(R, L, itemsize, target_bytes):
    if R <= 8:
        return R
    r = max(8, (target_bytes // (L * itemsize)) // 8 * 8)
    if r >= R:
        return R
    return r


# --------------------------------------------------------------------------
# Resident path: one or more whole samples per grid step.
# --------------------------------------------------------------------------
def _groupnorm_resident_kernel(x_ref, g_ref, b_ref, o_ref, *, inv_n, n_pad):
    x = x_ref[...]                                           # (B, R, L)
    xf = x.astype(jnp.float32)

    # Two-pass statistics in f32 (per-sample reductions).
    s = jnp.sum(xf, axis=(1, 2), keepdims=True)              # (B, 1, 1)
    mean = s * inv_n
    centered = xf - mean
    ss = jnp.sum(centered * centered, axis=(1, 2), keepdims=True)
    # Subtract the contribution of the zero-padded lanes ((0 - mean)^2 each).
    var = jnp.maximum((ss - n_pad * mean * mean) * inv_n, 0.0)
    inv_std = jax.lax.rsqrt(var + EPS)                       # EUP slot

    g = g_ref[...].astype(jnp.float32)                       # (1, R, 1)
    beta = b_ref[...].astype(jnp.float32)                    # (1, R, 1)
    scale = g * inv_std                                      # (B, R, 1) tiny

    if o_ref.dtype == jnp.float32:
        y = centered * scale + beta
    else:
        # Narrow-dtype normalize pass: cast tiny per-row scale/bias once,
        # keep the big-tile math in the native dtype (bf16 VPU on v6e/v7x).
        bias = (beta - mean * scale).astype(x.dtype)
        y = x * scale.astype(x.dtype) + bias
    o_ref[...] = y.astype(o_ref.dtype)


# --------------------------------------------------------------------------
# Tiled path (sample too large for VMEM): stats pass + normalize pass.
# --------------------------------------------------------------------------
def _stats_kernel(x_ref, sum_ref, sq_ref, *, r_blk, r_total):
    @pl.when(pl.program_id(1) == 0)
    def _():
        sum_ref[...] = jnp.zeros_like(sum_ref)
        sq_ref[...] = jnp.zeros_like(sq_ref)

    xf = x_ref[...].astype(jnp.float32)                      # (1, r_blk, L)
    # Mask rows past the real extent (ragged last R tile contains garbage).
    row = jax.lax.broadcasted_iota(jnp.int32, xf.shape, 1) + pl.program_id(1) * r_blk
    xf = jnp.where(row < r_total, xf, 0.0)
    sum_ref[...] += jnp.sum(xf, axis=(0, 1), keepdims=True)  # (1, 1, L) lane partials
    sq_ref[...] += jnp.sum(xf * xf, axis=(0, 1), keepdims=True)


def _normalize_kernel(x_ref, s_ref, b_ref, o_ref):
    x = x_ref[...]
    if o_ref.dtype == jnp.float32:
        y = x.astype(jnp.float32) * s_ref[...] + b_ref[...]
    else:
        y = x * s_ref[...].astype(x.dtype) + b_ref[...].astype(x.dtype)
    o_ref[...] = y.astype(o_ref.dtype)


# --------------------------------------------------------------------------
# Wrapper
# --------------------------------------------------------------------------
def prenorm(x_nchw, gamma, beta, *, fn=None, force_tiled=False, r_blk_override=None):
    """GroupNorm(1, C) over NCHW input, then fn (identity by default)."""
    N, C, H, W = x_nchw.shape
    HW = H * W
    itemsize = jnp.dtype(x_nchw.dtype).itemsize

    # Lane-dense layout: pad each channel's flattened spatial dim to a
    # multiple of 128 and view the sample as (R, 128).
    hw_pad = _round_up(HW, 128)
    x3 = x_nchw.reshape(N, C, HW)
    if hw_pad != HW:
        x3 = jnp.pad(x3, ((0, 0), (0, 0), (0, hw_pad - HW)))
    rows_per_ch = hw_pad // 128
    R = C * rows_per_ch
    L = 128
    x = x3.reshape(N, R, L)

    n_real = C * HW
    n_pad = C * (hw_pad - HW)
    inv_n = 1.0 / float(n_real)

    g_rows = jnp.repeat(gamma.astype(jnp.float32), rows_per_ch).reshape(1, R, 1)
    b_rows = jnp.repeat(beta.astype(jnp.float32), rows_per_ch).reshape(1, R, 1)

    vmem_cap, target_block_bytes, resident_cap = _vmem_budget()
    sample_bytes = R * L * itemsize
    small_pad_bytes = _round_up(R, 8) * 128 * 4  # one lane-padded (.,R,1) f32 operand

    use_tiled = force_tiled or sample_bytes > resident_cap

    if not use_tiled:
        # ------------------ resident path -------------------------------
        b_blk = max(1, min(N, target_block_bytes // sample_bytes))
        if N >= 2:
            b_blk = min(b_blk, _cdiv(N, 2))  # >= 2 grid steps -> both TCs on v7x
        grid_n = _cdiv(N, b_blk)

        block_bytes = b_blk * sample_bytes
        block_f32 = b_blk * R * L * 4
        vmem_need = (4 * block_bytes                       # in + out double-buffered
                     + 2 * block_f32                       # f32 upcast / centered temps
                     + 6 * small_pad_bytes * max(b_blk, 2)  # gamma/beta/scale/bias/mean/var
                     + (2 << 20))                          # Mosaic internal scratch slack
        vmem_limit = int(min(max(vmem_need, 32 << 20), vmem_cap))

        kernel = functools.partial(_groupnorm_resident_kernel,
                                   inv_n=inv_n, n_pad=float(n_pad))
        out = pl.pallas_call(
            kernel,
            out_shape=jax.ShapeDtypeStruct((N, R, L), x_nchw.dtype),
            grid_spec=pltpu.PrefetchScalarGridSpec(
                num_scalar_prefetch=0,
                grid=(grid_n,),
                in_specs=[
                    pl.BlockSpec((b_blk, R, L), lambda i: (i, 0, 0)),
                    pl.BlockSpec((1, R, 1), lambda i: (0, 0, 0)),
                    pl.BlockSpec((1, R, 1), lambda i: (0, 0, 0)),
                ],
                out_specs=pl.BlockSpec((b_blk, R, L), lambda i: (i, 0, 0)),
            ),
            compiler_params=pltpu.CompilerParams(
                dimension_semantics=("parallel",),
                vmem_limit_bytes=vmem_limit,
            ),
        )(x, g_rows, b_rows)
    else:
        # ------------------ two-phase tiled path -------------------------
        if r_blk_override is not None:
            r_blk = int(r_blk_override)
        else:
            r_blk = _pick_r_blk(R, L, itemsize, target_block_bytes)
        grid_r = _cdiv(R, r_blk)
        block_bytes = r_blk * L * itemsize
        block_f32 = r_blk * L * 4

        # Phase 1: per-sample sum / sum-of-squares (lane partial sums).
        vmem_need1 = 2 * block_bytes + 2 * block_f32 + 4 * (128 * 4) + (2 << 20)
        vmem_limit1 = int(min(max(vmem_need1, 32 << 20), vmem_cap))
        stats_kernel = functools.partial(_stats_kernel, r_blk=r_blk, r_total=R)
        sums, sqs = pl.pallas_call(
            stats_kernel,
            out_shape=(jax.ShapeDtypeStruct((N, 1, L), jnp.float32),
                       jax.ShapeDtypeStruct((N, 1, L), jnp.float32)),
            grid_spec=pltpu.PrefetchScalarGridSpec(
                num_scalar_prefetch=0,
                grid=(N, grid_r),
                in_specs=[pl.BlockSpec((1, r_blk, L), lambda n, r: (n, r, 0))],
                out_specs=(pl.BlockSpec((1, 1, L), lambda n, r: (n, 0, 0)),
                           pl.BlockSpec((1, 1, L), lambda n, r: (n, 0, 0))),
            ),
            compiler_params=pltpu.CompilerParams(
                dimension_semantics=("parallel", "arbitrary"),
                vmem_limit_bytes=vmem_limit1,
            ),
        )(x)

        # Tiny host-side (XLA) finish of the reductions + per-row affine fold.
        s = jnp.sum(sums, axis=-1, keepdims=True)            # (N, 1, 1)
        ss = jnp.sum(sqs, axis=-1, keepdims=True)
        mean = s * inv_n
        # One-pass variance here (a second full HBM read is not worth it).
        var = jnp.maximum(ss * inv_n - mean * mean, 0.0)
        inv_std = jax.lax.rsqrt(var + EPS)
        scale_rows = (g_rows * inv_std).astype(jnp.float32)   # (N, R, 1)
        bias_rows = (b_rows - mean * scale_rows).astype(jnp.float32)

        # Phase 2: elementwise normalize.
        vmem_need2 = (4 * block_bytes + block_f32
                      + 4 * _round_up(r_blk, 8) * 128 * 4 + (2 << 20))
        vmem_limit2 = int(min(max(vmem_need2, 32 << 20), vmem_cap))
        out = pl.pallas_call(
            _normalize_kernel,
            out_shape=jax.ShapeDtypeStruct((N, R, L), x_nchw.dtype),
            grid_spec=pltpu.PrefetchScalarGridSpec(
                num_scalar_prefetch=0,
                grid=(N, grid_r),
                in_specs=[
                    pl.BlockSpec((1, r_blk, L), lambda n, r: (n, r, 0)),
                    pl.BlockSpec((1, r_blk, 1), lambda n, r: (n, r, 0)),
                    pl.BlockSpec((1, r_blk, 1), lambda n, r: (n, r, 0)),
                ],
                out_specs=pl.BlockSpec((1, r_blk, L), lambda n, r: (n, r, 0)),
            ),
            compiler_params=pltpu.CompilerParams(
                dimension_semantics=("parallel", "parallel"),
                vmem_limit_bytes=vmem_limit2,
            ),
        )(x, scale_rows, bias_rows)

    out = out.reshape(N, C, hw_pad)
    if hw_pad != HW:
        out = out[:, :, :HW]
    out = out.reshape(N, C, H, W)
    if fn is not None:
        out = fn(out)   # PreNorm's injected fn (JAX callable); identity otherwise.
    return out


def prenorm_reference(x_nchw, gamma, beta):
    N, C, H, W = x_nchw.shape
    xf = x_nchw.astype(jnp.float32).reshape(N, -1)
    mean = xf.mean(axis=1, keepdims=True)
    var = ((xf - mean) ** 2).mean(axis=1, keepdims=True)
    y = (xf - mean) / jnp.sqrt(var + EPS)
    y = y.reshape(N, C, H, W)
    y = y * gamma.reshape(1, C, 1, 1).astype(jnp.float32) \
        + beta.reshape(1, C, 1, 1).astype(jnp.float32)
    return y.astype(x_nchw.dtype)


if __name__ == "__main__":
    key = jax.random.PRNGKey(0)
    k1, k2, k3, k4, k5 = jax.random.split(key, 5)

    # 1) Base case: default GroupNorm affine (weight=1, bias=0), HW % 128 == 0.
    N, C, H, W = 2, 4, 16, 16
    x = jax.random.normal(k1, (N, C, H, W), dtype=jnp.float32)
    gamma = jnp.ones((C,), jnp.float32)
    beta = jnp.zeros((C,), jnp.float32)
    out = jax.block_until_ready(prenorm(x, gamma, beta))
    ref = prenorm_reference(x, gamma, beta)
    assert out.shape == (N, C, H, W)
    assert jnp.allclose(out, ref, atol=1e-4, rtol=1e-4), "base mismatch"

    # 2) Non-trivial affine parameters.
    gamma2 = jax.random.normal(k2, (C,), dtype=jnp.float32)
    beta2 = jax.random.normal(k3, (C,), dtype=jnp.float32)
    out2 = jax.block_until_ready(prenorm(x, gamma2, beta2))
    ref2 = prenorm_reference(x, gamma2, beta2)
    assert jnp.allclose(out2, ref2, atol=1e-4, rtol=1e-4), "affine mismatch"

    # 3) HW not a multiple of 128 -> lane-padding path with stats correction.
    xp = jax.random.normal(k4, (2, 4, 10, 10), dtype=jnp.float32)
    outp = jax.block_until_ready(prenorm(xp, gamma2, beta2))
    refp = prenorm_reference(xp, gamma2, beta2)
    assert jnp.allclose(outp, refp, atol=1e-4, rtol=1e-4), "padded-HW mismatch"

    # 4) Force the two-phase tiled path (large-sample fallback) with a ragged
    #    row tile (R = 24, r_blk = 16) to exercise accumulation + masking.
    xt = jax.random.normal(k5, (2, 4, 16, 48), dtype=jnp.float32)
    outt = jax.block_until_ready(
        prenorm(xt, gamma2, beta2, force_tiled=True, r_blk_override=16))
    reft = prenorm_reference(xt, gamma2, beta2)
    assert jnp.allclose(outt, reft, atol=1e-4, rtol=1e-4), "tiled-path mismatch"

    # 5) bf16 input: stats in f32, normalize pass in bf16.
    xb = jax.random.normal(k1, (N, C, H, W), dtype=jnp.bfloat16)
    outb = jax.block_until_ready(prenorm(xb, gamma, beta))
    refb = prenorm_reference(xb, gamma, beta)
    assert jnp.allclose(outb.astype(jnp.float32), refb.astype(jnp.float32),
                        atol=8e-2, rtol=8e-2), "bf16 mismatch"

    print("KERNEL_OK")
</pallas_src>

<mosaic_0001>
module attributes {stable_mosaic.version = 11 : i64} {
  func.func @_groupnorm_resident_kernel(%arg0: i32, %arg1: memref<1x8x128xf32, #tpu.memory_space<vmem>>, %arg2: memref<1x8x1xf32, #tpu.memory_space<vmem>>, %arg3: memref<1x8x1xf32, #tpu.memory_space<vmem>>, %arg4: memref<1x8x128xf32, #tpu.memory_space<vmem>>) attributes {dimension_semantics = [#tpu.dimension_semantics<parallel>], iteration_bounds = array<i64: 2>, scalar_prefetch = 0 : i64, scratch_operands = 0 : i64, tpu.core_type = #tpu.core_type<tc>, window_params = [{transform_indices = @transform_0, window_bounds = array<i64: 1, 8, 128>}, {pipeline_mode = #tpu.pipeline_mode<synchronous>, transform_indices = @transform_1, window_bounds = array<i64: 1, 8, 1>}, {pipeline_mode = #tpu.pipeline_mode<synchronous>, transform_indices = @transform_2, window_bounds = array<i64: 1, 8, 1>}, {transform_indices = @transform_3, window_bounds = array<i64: 1, 8, 128>}]} {
    %c0 = arith.constant 0 : index
    %c0_0 = arith.constant 0 : index
    %c0_1 = arith.constant 0 : index
    %0 = vector.load %arg1[%c0, %c0_0, %c0_1] : memref<1x8x128xf32, #tpu.memory_space<vmem>>, vector<1x8x128xf32>
    %cst = arith.constant dense<0.000000e+00> : vector<1xf32>
    %1 = vector.multi_reduction <add>, %0, %cst [1, 2] : vector<1x8x128xf32> to vector<1xf32>
    %2 = vector.shape_cast %1 : vector<1xf32> to vector<1x1x1xf32>
    %cst_2 = arith.constant 9.765625E-4 : f32
    %3 = vector.broadcast %cst_2 : f32 to vector<1x1x1xf32>
    %4 = arith.mulf %2, %3 : vector<1x1x1xf32>
    %5 = vector.broadcast %4 : vector<1x1x1xf32> to vector<1x8x128xf32>
    %6 = arith.subf %0, %5 : vector<1x8x128xf32>
    %7 = arith.mulf %6, %6 : vector<1x8x128xf32>
    %cst_3 = arith.constant dense<0.000000e+00> : vector<1xf32>
    %8 = vector.multi_reduction <add>, %7, %cst_3 [1, 2] : vector<1x8x128xf32> to vector<1xf32>
    %9 = vector.shape_cast %8 : vector<1xf32> to vector<1x1x1xf32>
    %cst_4 = arith.constant 0.000000e+00 : f32
    %10 = vector.broadcast %cst_4 : f32 to vector<1x1x1xf32>
    %11 = arith.mulf %10, %4 : vector<1x1x1xf32>
    %12 = arith.mulf %11, %4 : vector<1x1x1xf32>
    %13 = arith.subf %9, %12 : vector<1x1x1xf32>
    %cst_5 = arith.constant 9.765625E-4 : f32
    %14 = vector.broadcast %cst_5 : f32 to vector<1x1x1xf32>
    %15 = arith.mulf %13, %14 : vector<1x1x1xf32>
    %cst_6 = arith.constant 0.000000e+00 : f32
    %16 = vector.broadcast %cst_6 : f32 to vector<1x1x1xf32>
    %17 = arith.maximumf %15, %16 : vector<1x1x1xf32>
    %cst_7 = arith.constant 9.99999974E-6 : f32
    %18 = vector.broadcast %cst_7 : f32 to vector<1x1x1xf32>
    %19 = arith.addf %17, %18 : vector<1x1x1xf32>
    %20 = math.rsqrt %19 : vector<1x1x1xf32>
    %c0_8 = arith.constant 0 : index
    %c0_9 = arith.constant 0 : index
    %c0_10 = arith.constant 0 : index
    %21 = vector.load %arg2[%c0_8, %c0_9, %c0_10] : memref<1x8x1xf32, #tpu.memory_space<vmem>>, vector<1x8x1xf32>
    %c0_11 = arith.constant 0 : index
    %c0_12 = arith.constant 0 : index
    %c0_13 = arith.constant 0 : index
    %22 = vector.load %arg3[%c0_11, %c0_12, %c0_13] : memref<1x8x1xf32, #tpu.memory_space<vmem>>, vector<1x8x1xf32>
    %23 = vector.broadcast %20 : vector<1x1x1xf32> to vector<1x8x1xf32>
    %24 = arith.mulf %21, %23 : vector<1x8x1xf32>
    %25 = vector.broadcast %24 : vector<1x8x1xf32> to vector<1x8x128xf32>
    %26 = arith.mulf %6, %25 : vector<1x8x128xf32>
    %27 = vector.broadcast %22 : vector<1x8x1xf32> to vector<1x8x128xf32>
    %28 = arith.addf %26, %27 : vector<1x8x128xf32>
    %c0_14 = arith.constant 0 : index
    %c0_15 = arith.constant 0 : index
    %c0_16 = arith.constant 0 : index
    %29 = vector.load %arg4[%c0_14, %c0_15, %c0_16] : memref<1x8x128xf32, #tpu.memory_space<vmem>>, vector<1x8x128xf32>
    tpu.vector_store %arg4[%c0_14, %c0_15, %c0_16], %28 {strides = array<i32>} : memref<1x8x128xf32, #tpu.memory_space<vmem>>, vector<1x8x128xf32>,
    return
  }
  func.func @transform_0(%arg0: i32) -> (i32, i32, i32) {
    %c0_i32 = arith.constant 0 : i32
    %c0_i32_0 = arith.constant 0 : i32
    %c0_i32_1 = arith.constant 0 : i32
    return %arg0, %c0_i32, %c0_i32_0 : i32, i32, i32
  }
  func.func @transform_1(%arg0: i32) -> (i32, i32, i32) {
    %c0_i32 = arith.constant 0 : i32
    %c0_i32_0 = arith.constant 0 : i32
    %c0_i32_1 = arith.constant 0 : i32
    %c0_i32_2 = arith.constant 0 : i32
    return %c0_i32, %c0_i32_0, %c0_i32_1 : i32, i32, i32
  }
  func.func @transform_2(%arg0: i32) -> (i32, i32, i32) {
    %c0_i32 = arith.constant 0 : i32
    %c0_i32_0 = arith.constant 0 : i32
    %c0_i32_1 = arith.constant 0 : i32
    %c0_i32_2 = arith.constant 0 : i32
    return %c0_i32, %c0_i32_0, %c0_i32_1 : i32, i32, i32
  }
  func.func @transform_3(%arg0: i32) -> (i32, i32, i32) {
    %c0_i32 = arith.constant 0 : i32
    %c0_i32_0 = arith.constant 0 : i32
    %c0_i32_1 = arith.constant 0 : i32
    return %arg0, %c0_i32, %c0_i32_0 : i32, i32, i32
  }
}

</mosaic_0001>

<bundles_post_ra>
// kernel: tpu_custom_call.1
= control target key start
LH: loop header
LB: loop body
LE: loop exit
PB: predicated region body
PF: predicated region fallthrough
CT: control target
= control target key end

     0   :  { %8 = vsyncpa [#allocation3], 0  ;;  %s523_s0 = inlined_call_operand.vmem [shape: f32[2,8,128], index: 0, kind: input, shape index: {}]   ;;  %s524_s1 = inlined_call_operand.vmem [shape: f32[1,8,1], index: 1, kind: input, shape index: {}]   ;;  %s525_s2 = inlined_call_operand.vmem [shape: f32[1,8,1], index: 2, kind: input, shape index: {}]   ;;  %s526_s3 = inlined_call_operand.hbm [shape: f32[2,8,128], index: 3, kind: output, shape index: {}]  }
   0x1   :  { %10 = vsyncpa [#allocation3 + $0x1], 0  ;;  %s432_s12 = smov 0   ;;  %s434_s13 = smov 0  }
   0x2   :  { %s436_s14 = smov 0   ;;  %s438_s15 = smov 0  }
   0x3 LB: > { %s453_s16 = sadd.s32 4294967295, %s409_s15   ;;  %s293_s17 = sadd.s32 4294967294, %s409_s15   ;;  %s409_s15 = sphi %s438_s15, %s532_s15   ;;  %s405_s14 = sphi %s436_s14, %s531_s14   ;;  %s401_s13 = sphi %s434_s13, %s530_s13   ;;  %s397_s12 = sphi %s432_s12, %s529_s12  }
   0x4   : > { %s457_s18 = sadd.s32 1, %s409_s15   ;;  %s91_s19 = sadd.s32 1, %s405_s14 }
   0x5   : > { %s88_s20 = ssub.s32 %s409_s15, %s457_s18  ;;  %p101_p0 = scmp.ne.s32.totalorder %s405_s14, %s401_s13 }
   0x6   : > { %p89_p1 = scmp.eq.s32.totalorder %s88_s20, 0  ;;  %p102_p2 = scmp.eq.s32.totalorder %s453_s16, 1 }
   0x7   : > { %p107_p3 = scmp.ne.s32.totalorder %s401_s13, %s397_s12  ;;  %p108_p4 = scmp.eq.s32.totalorder %s293_s17, 1 }
   0x8   : > { %s468_s21 = scalar_select %p89_p1, %s405_s14, %s91_s19  }
   0x9   : > { %p470_p5 = por %p102_p2, %p101_p0  ;;  %p474_p6 = por %p108_p4, %p107_p3 }
   0xa   : > { %p296_p7 = scmp.ge.s32.totalorder %s409_s15, 1  ;;  %p139_p8 = scmp.lt.s32.totalorder %s409_s15, 3 }
   0xc   : > { %p140_p9 = pnand %p296_p7, %p139_p8 }
   0xd   : > { %p162_p10 = scmp.lt.s32.totalorder (!%p140_p9), %s453_s16, 1  ;;  %s159_s6 = sand.u32 (!%p140_p9), 1, %s401_s13  }
   0xe   : > { %143 = sbr.rel (%p140_p9) target bundleno = 442 (0x1ba), region = 32  ;;  %s297_s7 = sshll.u32 (!%p140_p9), %s159_s6, 3 }
   0xf   : > { %s300_s8 = sshll.u32 (!%p140_p9), %s453_s16, 3  ;;  %s161_s17 = scalar_lea.vmem (!%p140_p9), [#allocation2], %s297_s7 }
  0x10   : > { %s229_s11 = scalar_lea.hbm (!%p140_p9), %s526_s3, %s300_s8  ;;  %s231_s19 = sshll.u32 (!%p140_p9), %s161_s17, 4  ;;  %s232_s19 = int_to_ptr.vmem [resolvable:$true] %s231_s19 }
  0x11   : > { %s233_s20 = sshll.u32 (!%p140_p9), %s229_s11, 4  ;;  %s234_s20 = int_to_ptr.hbm [resolvable:$true] %s233_s20 }
  0x13   : > { %s163_s24 = scalar_select %p162_p10, %s453_s16, 1  ;;  %v411_v11 = vmov 0   ;;  %v202_v31 = vld [vmem:[%s524_s1] sm:$0xff] }
  0x14   : > { %343 = vset.pattern.permute.xlu1 %v411_v11  ;;  %344 = vset.pattern.permute.xlu0 %v411_v11  ;;  %v203_v34 = vld [vmem:[%s525_s2] sm:$0xff] }
  0x15   : > { %s298_s25 = sshll.u32 %s163_s24, 3  ;;  %s219_s24 = scalar_lea.sflag [#allocation3], %s159_s6 }
  0x16   : > { %s165_s28 = scalar_lea.vmem %s523_s0, %s298_s25  ;;  %s361_s25 = sshra.s32 %s234_s20, 4  ;;  %s362_s25 = int_to_ptr.hbm [resolvable:$true] %s361_s25 }
  0x17   : > { %v166_v0 = vld [vmem:[%s165_s28] sm:$0xff]  ;;  %s363_s26 = scalar_lea.hbm %s362_s25, 8  ;;  %s367_s28 = scalar_lea.hbm %s526_s3, 16 }
  0x18   : > { %167 = vadd.xlane.f32.xlu0 %v166_v0  ;;  %p364_p11 = scmp.ne.s32.totalorder %s362_s25, %s363_s26  ;;  %p368_p0 = scmp.lt.s32.totalorder %s362_s25, %s526_s3 }
  0x19   : > { %p369_p1 = scmp.lt.s32.totalorder %s367_s28, %s363_s26 }
  0x1a   : > { %p365_p12 = pnand %p364_p11, %p470_p5 }
  0x1b   : > { %p370_p2 = por %p369_p1, %p368_p0 }
  0x1c   : > { %p366_p13 = pneg %p365_p12 }
  0x1e   : > { %p371_p3 = pnand %p370_p2, %p366_p13 }
  0x8b   : > { %v168_v1 = vpop.xlane.xlu0 %167 }
  0x8c   : > { %v169_v2 = vrot.slane %v168_v1, 4 }
  0x8e   : > { %v170_v3 = vadd.f32 %v169_v2, %v168_v1 }
  0x90   : > { %v171_v4 = vrot.slane %v170_v3, 2 }
  0x92   : > { %v172_v5 = vadd.f32 %v171_v4, %v170_v3 }
  0x94   : > { %v173_v6 = vrot.slane %v172_v5, 1 }
  0x96   : > { %v174_v7 = vadd.f32 %v173_v6, %v172_v5 }
  0x98   : > { %v175_v8 = vmul.f32 0.0009765625, %v174_v7 }
  0x9a   : > { %v176_v9 = vsub.f32 %v166_v0, %v175_v8  ;;  %v186_v16 = vmul.f32 0.0, %v175_v8 }
  0x9c   : > { %v177_v10 = vmul.f32 %v176_v9, %v176_v9  ;;  %v187_v19 = vmul.f32 %v186_v16, %v175_v8 }
  0x9e   : > { %178 = vadd.xlane.f32.xlu0 %v177_v10 }
 0x111   : > { %v179_v12 = vpop.xlane.xlu0 %178 }
 0x112   : > { %v180_v13 = vrot.slane %v179_v12, 4 }
 0x114   : > { %v181_v14 = vadd.f32 %v180_v13, %v179_v12 }
 0x116   : > { %v182_v15 = vrot.slane %v181_v14, 2 }
 0x118   : > { %v183_v17 = vadd.f32 %v182_v15, %v181_v14 }
 0x11a   : > { %v184_v18 = vrot.slane %v183_v17, 1 }
 0x11c   : > { %v185_v20 = vadd.f32 %v184_v18, %v183_v17 }
 0x11e   : > { %v188_v21 = vsub.f32 %v185_v20, %v187_v19 }
 0x120   : > { %v189_v22 = vmul.f32 0.0009765625, %v188_v21 }
 0x122   : > { %v190_v23 = vmax.f32 %v189_v22, 0.0 }
 0x124   : > { %v191_v24 = vadd.f32 1e-05, %v190_v23 }
 0x126   : > { %345 = vrsqrt.f32 %v191_v24  ;;  %vm198_vm1 = vweird.f32 %v191_v24 }
 0x12c   : > { %v346_v25 = vpop.eup %345 }
 0x12d   : > { %v193_v26 = vmul.f32 %v346_v25, %v191_v24  ;;  %vm199_vm0 = vweird.f32 %v346_v25 }
 0x12e   : > { %vm200_vm2 = vmor %vm198_vm1, %vm199_vm0 }
 0x12f   : > { %v194_v27 = vmul.f32 %v346_v25, %v193_v26 }
 0x131   : > { %v195_v28 = vmul.f32 0.5, %v194_v27 }
 0x133   : > { %v196_v29 = vsub.f32 1.5, %v195_v28 }
 0x135   : > { %v197_v30 = vmul.f32 %v346_v25, %v196_v29 }
 0x137   : > { %v201_v32 = vsel %vm200_vm2, %v346_v25, %v197_v30 }
 0x138   : > { %v204_v33 = vmul.f32 %v202_v31, %v201_v32 }
 0x13a   : > { %207 = vperm.xlu1 %343, %v204_v33  }
 0x142   : > { %213 = vperm.xlu1 %343, %v203_v34  }
 0x1ac   : > { %v208_v35 = vpop.permute.xlu1 %207 }
 0x1ad   : > { %v210_v36 = vmul.f32 %v208_v35, %v176_v9 }
 0x1b4   : > { %v214_v37 = vpop.permute.xlu1 %213 }
 0x1b5   : > { %v216_v38 = vadd.f32 %v214_v37, %v210_v36 }
 0x1b7   : > { %217 = vst [vmem:[%s161_s17] sm:$0xff] %v216_v38 }
 0x1b8   : > { %374 = shalt.err (!%p371_p3)
}
 0x1b9   : > { %303 = dma.vmem_to_hbm [thread:$0]  (%p470_p5), %s232_s19, 128, %s234_s20, %s219_s24  }
 0x1ba PF: > { %p309_p4 = scmp.ge.s32.totalorder %s409_s15, 2  ;;  %s245_s4 = sand.u32 1, %s397_s12  }
 0x1bb   : > { %s246_s5 = scalar_lea.sflag [#allocation3], %s245_s4 }
 0x1bc   : > { %p306_p7 = pnand %p309_p4, %p474_p6 }
 0x1be   : > { %p307_p8 = pneg %p306_p7 }
 0x1c0   : > { %392 = dma.done.wait (%p307_p8), %s246_s5, 128  }
 0x1c1   : > { %394 = vsyncadd (%p307_p8), %s246_s5, 4294967168  ;;  %p13_p9 = scmp.ge.s32.totalorder %s457_s18, 4   ;;  %s529_s12 = smov %s401_s13 }
 0x1c2   : > { %s530_s13 = smov %s405_s14  ;;  %s531_s14 = smov %s468_s21 }
 0x1c3   : > { %s532_s15 = smov %s457_s18  ;;  %15 = sbr.rel (!%p13_p9) target bundleno = 3 (0x3), region = 67 }
 0x1c8   :  { %252 = vsyncpa [#allocation3], 1 }
 0x1c9   :  { %254 = vsyncpa [#allocation3 + $0x1], 1 }

</bundles_post_ra>
